<compile_context>
chip_gen: v6e
topology: v6e:2x2x1
jax: 0.10.0
libtpu: 0.0.40
codegen_flags: <defaults>
</compile_context>

<pallas_src>
import math
import jax
import jax.numpy as jnp
from jax.experimental import pallas as pl
from jax.experimental.pallas import tpu as pltpu


def _kan_kernel(x_ref, bw_ref, cw_ref, o_ref, acc_ref):
    # x_ref: (tm, tk) f32-ish   bw_ref/cw_ref: (tk, tn) bf16
    # o_ref: (tm, tn)           acc_ref: (tm, tn) f32 scratch
    @pl.when(pl.program_id(2) == 0)
    def _():
        acc_ref[...] = jnp.zeros_like(acc_ref)

    x = x_ref[...].astype(jnp.float32)

    # SiLU base branch (elementwise in f32, bf16 operands into the MXU).
    silu = (x * jax.nn.sigmoid(x)).astype(jnp.bfloat16)
    # Cauchy kernel branch: 1 / (1 + gamma * x^2), gamma = 1.0 (EUP reciprocal).
    ck = pl.reciprocal(1.0 + x * x, approx=True).astype(jnp.bfloat16)

    acc_ref[...] += jnp.dot(silu, bw_ref[...], preferred_element_type=jnp.float32)
    acc_ref[...] += jnp.dot(ck, cw_ref[...], preferred_element_type=jnp.float32)

    @pl.when(pl.program_id(2) == pl.num_programs(2) - 1)
    def _():
        o_ref[...] = acc_ref[...].astype(o_ref.dtype)


def _round_up(v, m):
    return ((v + m - 1) // m) * m


def cauchy_kan_linear(x, base_weight, cauchy_weight, cauchy_scaler,
                      *, tm=256, tn=256, tk=256):
    """x: (..., in_features); weights: (out_features, in_features).

    tm/tn/tk default to 256 (v6e/v7x MXU-friendly); on v5e 128-multiples also
    map cleanly. Tiles are clamped to the (padded) problem size, and any batch
    size is handled by zero-padding (no divisibility requirement on callers).
    """
    out_features, in_features = base_weight.shape
    assert x.shape[-1] == in_features
    original_shape = x.shape

    x2 = x.reshape(-1, in_features)
    batch = x2.shape[0]

    # Grid-invariant hoists (done once, outside the grid loop):
    #   - fuse cauchy_weight * cauchy_scaler
    #   - transpose to (in, out) for lane-dense (tm,tk)@(tk,tn) matmuls
    #   - cast weights to bf16 (MXU-native, half the weight DMA bytes)
    bw_t = base_weight.T.astype(jnp.bfloat16)
    cw_t = (cauchy_weight * cauchy_scaler).T.astype(jnp.bfloat16)

    # Effective tile sizes (lane/sublane friendly, clamped to padded dims).
    tm_e = min(tm, _round_up(batch, 8))
    tn_e = min(tn, _round_up(out_features, 128))
    tk_e = min(tk, _round_up(in_features, 128))

    Mp = _round_up(batch, tm_e)
    Np = _round_up(out_features, tn_e)
    Kp = _round_up(in_features, tk_e)

    # Zero padding is exact: padded rows / output columns are sliced off, and
    # although ck(0)=1 on padded input features, the corresponding padded
    # weight rows are zero so they contribute nothing.
    x_p = jnp.pad(x2, ((0, Mp - batch), (0, Kp - in_features)))
    bw_p = jnp.pad(bw_t, ((0, Kp - in_features), (0, Np - out_features)))
    cw_p = jnp.pad(cw_t, ((0, Kp - in_features), (0, Np - out_features)))

    grid = (Mp // tm_e, Np // tn_e, Kp // tk_e)

    out = pl.pallas_call(
        _kan_kernel,
        out_shape=jax.ShapeDtypeStruct((Mp, Np), x.dtype),
        grid_spec=pltpu.PrefetchScalarGridSpec(
            num_scalar_prefetch=0,
            grid=grid,
            in_specs=[
                pl.BlockSpec((tm_e, tk_e), lambda i, j, k: (i, k)),
                pl.BlockSpec((tk_e, tn_e), lambda i, j, k: (k, j)),
                pl.BlockSpec((tk_e, tn_e), lambda i, j, k: (k, j)),
            ],
            out_specs=pl.BlockSpec((tm_e, tn_e), lambda i, j, k: (i, j)),
            scratch_shapes=[pltpu.VMEM((tm_e, tn_e), jnp.float32)],
        ),
        compiler_params=pltpu.CompilerParams(
            dimension_semantics=("parallel", "parallel", "arbitrary"),
        ),
    )(x_p, bw_p, cw_p)

    out = out[:batch, :out_features]
    return out.reshape(*original_shape[:-1], out_features)


def init_params(key, in_features, out_features,
                scale_noise=0.1, scale_base=1.0, scale_cauchy=1.0):
    """Deterministic synthetic init mirroring CauchyKANLinear.reset_parameters."""
    k_base, k_noise, k_scaler = jax.random.split(key, 3)

    # kaiming_uniform_ with a = sqrt(5)*scale: bound = sqrt(6/((1+a^2)*fan_in))
    def kaiming_uniform(k, scale):
        a = math.sqrt(5) * scale
        bound = math.sqrt(6.0 / ((1.0 + a * a) * in_features))
        return jax.random.uniform(
            k, (out_features, in_features), jnp.float32, -bound, bound)

    base_weight = kaiming_uniform(k_base, scale_base)
    noise = (jax.random.uniform(k_noise, (out_features, in_features),
                                jnp.float32) - 0.5) * scale_noise
    cauchy_weight = noise  # standalone scale enabled -> multiplied by 1.0
    cauchy_scaler = kaiming_uniform(k_scaler, scale_cauchy)
    return base_weight, cauchy_weight, cauchy_scaler


def _reference(x, base_weight, cauchy_weight, cauchy_scaler):
    """Pure-JAX f32 reference of the PyTorch forward."""
    in_features = base_weight.shape[1]
    x2 = x.reshape(-1, in_features)
    base_out = jax.nn.silu(x2) @ base_weight.T
    ck = 1.0 / (1.0 + x2 ** 2)
    cauchy_out = ck @ (cauchy_weight * cauchy_scaler).T
    out = base_out + cauchy_out
    return out.reshape(*x.shape[:-1], base_weight.shape[0])


if __name__ == "__main__":
    in_features = 32
    out_features = 64
    batch, seq = 2, 8   # flattened batch = 16

    key = jax.random.PRNGKey(0)
    k_x, k_p = jax.random.split(key)
    x = jax.random.normal(k_x, (batch, seq, in_features), jnp.float32)
    base_weight, cauchy_weight, cauchy_scaler = init_params(
        k_p, in_features, out_features)

    out = cauchy_kan_linear(x, base_weight, cauchy_weight, cauchy_scaler)
    out = jax.block_until_ready(out)

    ref = _reference(x, base_weight, cauchy_weight, cauchy_scaler)
    assert out.shape == (batch, seq, out_features)
    # bf16 MXU operands + approximate EUP reciprocal: compare to f32 reference
    # with a correspondingly relaxed tolerance.
    assert jnp.allclose(out, ref, atol=2e-2, rtol=2e-2), \
        float(jnp.max(jnp.abs(out - ref)))

    print("KERNEL_OK")
</pallas_src>

<mosaic_0001>
module attributes {stable_mosaic.version = 11 : i64} {
  func.func @_kan_kernel(%arg0: i32, %arg1: i32, %arg2: i32, %arg3: memref<16x128xf32, #tpu.memory_space<vmem>>, %arg4: memref<128x128xbf16, #tpu.memory_space<vmem>>, %arg5: memref<128x128xbf16, #tpu.memory_space<vmem>>, %arg6: memref<16x128xf32, #tpu.memory_space<vmem>>, %arg7: memref<16x128xf32, #tpu.memory_space<vmem>>) attributes {dimension_semantics = [#tpu.dimension_semantics<parallel>, #tpu.dimension_semantics<parallel>, #tpu.dimension_semantics<arbitrary>], iteration_bounds = array<i64: 1, 1, 1>, scalar_prefetch = 0 : i64, scratch_operands = 1 : i64, tpu.core_type = #tpu.core_type<tc>, window_params = [{transform_indices = @transform_0, window_bounds = array<i64: 16, 128>}, {transform_indices = @transform_1, window_bounds = array<i64: 128, 128>}, {transform_indices = @transform_2, window_bounds = array<i64: 128, 128>}, {transform_indices = @transform_3, window_bounds = array<i64: 16, 128>}]} {
    %c0_i32 = arith.constant 0 : i32
    %0 = arith.cmpi eq, %arg2, %c0_i32 : i32
    %1 = arith.extui %0 : i1 to i32
    %c0_i32_0 = arith.constant 0 : i32
    %2 = arith.cmpi ne, %1, %c0_i32_0 : i32
    scf.if %2 {
      %cst_19 = arith.constant 0.000000e+00 : f32
      %29 = vector.broadcast %cst_19 : f32 to vector<16x128xf32>
      %c0_20 = arith.constant 0 : index
      %c0_21 = arith.constant 0 : index
      %30 = vector.load %arg7[%c0_20, %c0_21] : memref<16x128xf32, #tpu.memory_space<vmem>>, vector<16x128xf32>
      tpu.vector_store %arg7[%c0_20, %c0_21], %29 {strides = array<i32>} : memref<16x128xf32, #tpu.memory_space<vmem>>, vector<16x128xf32>,
    } else {
    }
    %c0 = arith.constant 0 : index
    %c0_1 = arith.constant 0 : index
    %3 = vector.load %arg3[%c0, %c0_1] : memref<16x128xf32, #tpu.memory_space<vmem>>, vector<16x128xf32>
    %4 = arith.negf %3 : vector<16x128xf32>
    %5 = math.exp %4 : vector<16x128xf32>
    %cst = arith.constant 1.000000e+00 : f32
    %6 = vector.broadcast %cst : f32 to vector<16x128xf32>
    %7 = arith.addf %6, %5 : vector<16x128xf32>
    %8 = arith.divf %6, %7 : vector<16x128xf32>
    %9 = arith.mulf %3, %8 : vector<16x128xf32>
    %10 = arith.truncf %9 : vector<16x128xf32> to vector<16x128xbf16>
    %11 = arith.mulf %3, %3 : vector<16x128xf32>
    %cst_2 = arith.constant 1.000000e+00 : f32
    %12 = vector.broadcast %cst_2 : f32 to vector<16x128xf32>
    %13 = arith.addf %12, %11 : vector<16x128xf32>
    %14 = tpu.reciprocal %13 {approx = true} : vector<16x128xf32> -> vector<16x128xf32>
    %15 = arith.truncf %14 : vector<16x128xf32> to vector<16x128xbf16>
    %c0_3 = arith.constant 0 : index
    %c0_4 = arith.constant 0 : index
    %16 = vector.load %arg7[%c0_3, %c0_4] : memref<16x128xf32, #tpu.memory_space<vmem>>, vector<16x128xf32>
    %c0_5 = arith.constant 0 : index
    %c0_6 = arith.constant 0 : index
    %17 = vector.load %arg4[%c0_5, %c0_6] : memref<128x128xbf16, #tpu.memory_space<vmem>>, vector<128x128xbf16>
    %cst_7 = arith.constant dense<0.000000e+00> : vector<16x128xf32>
    %18 = tpu.matmul %10, %17, %cst_7 {dimension_numbers = #tpu.dot_dimension_numbers<[1], [0], [0], [1], [0, 0, 1, 1], [], []>} : vector<16x128xbf16>, vector<128x128xbf16>, vector<16x128xf32> -> vector<16x128xf32>
    %19 = arith.addf %16, %18 : vector<16x128xf32>
    %c0_8 = arith.constant 0 : index
    %c0_9 = arith.constant 0 : index
    %20 = vector.load %arg7[%c0_8, %c0_9] : memref<16x128xf32, #tpu.memory_space<vmem>>, vector<16x128xf32>
    tpu.vector_store %arg7[%c0_8, %c0_9], %19 {strides = array<i32>} : memref<16x128xf32, #tpu.memory_space<vmem>>, vector<16x128xf32>,
    %c0_10 = arith.constant 0 : index
    %c0_11 = arith.constant 0 : index
    %21 = vector.load %arg7[%c0_10, %c0_11] : memref<16x128xf32, #tpu.memory_space<vmem>>, vector<16x128xf32>
    %c0_12 = arith.constant 0 : index
    %c0_13 = arith.constant 0 : index
    %22 = vector.load %arg5[%c0_12, %c0_13] : memref<128x128xbf16, #tpu.memory_space<vmem>>, vector<128x128xbf16>
    %cst_14 = arith.constant dense<0.000000e+00> : vector<16x128xf32>
    %23 = tpu.matmul %15, %22, %cst_14 {dimension_numbers = #tpu.dot_dimension_numbers<[1], [0], [0], [1], [0, 0, 1, 1], [], []>} : vector<16x128xbf16>, vector<128x128xbf16>, vector<16x128xf32> -> vector<16x128xf32>
    %24 = arith.addf %21, %23 : vector<16x128xf32>
    %c0_15 = arith.constant 0 : index
    %c0_16 = arith.constant 0 : index
    %25 = vector.load %arg7[%c0_15, %c0_16] : memref<16x128xf32, #tpu.memory_space<vmem>>, vector<16x128xf32>
    tpu.vector_store %arg7[%c0_15, %c0_16], %24 {strides = array<i32>} : memref<16x128xf32, #tpu.memory_space<vmem>>, vector<16x128xf32>,
    %c0_i32_17 = arith.constant 0 : i32
    %26 = arith.cmpi eq, %arg2, %c0_i32_17 : i32
    %27 = arith.extui %26 : i1 to i32
    %c0_i32_18 = arith.constant 0 : i32
    %28 = arith.cmpi ne, %27, %c0_i32_18 : i32
    scf.if %28 {
      %c0_19 = arith.constant 0 : index
      %c0_20 = arith.constant 0 : index
      %29 = vector.load %arg7[%c0_19, %c0_20] : memref<16x128xf32, #tpu.memory_space<vmem>>, vector<16x128xf32>
      %c0_21 = arith.constant 0 : index
      %c0_22 = arith.constant 0 : index
      %30 = vector.load %arg6[%c0_21, %c0_22] : memref<16x128xf32, #tpu.memory_space<vmem>>, vector<16x128xf32>
      tpu.vector_store %arg6[%c0_21, %c0_22], %29 {strides = array<i32>} : memref<16x128xf32, #tpu.memory_space<vmem>>, vector<16x128xf32>,
    } else {
    }
    return
  }
  func.func @transform_0(%arg0: i32, %arg1: i32, %arg2: i32) -> (i32, i32) {
    %c0_i32 = arith.constant 0 : i32
    return %arg0, %arg2 : i32, i32
  }
  func.func @transform_1(%arg0: i32, %arg1: i32, %arg2: i32) -> (i32, i32) {
    %c0_i32 = arith.constant 0 : i32
    return %arg2, %arg1 : i32, i32
  }
  func.func @transform_2(%arg0: i32, %arg1: i32, %arg2: i32) -> (i32, i32) {
    %c0_i32 = arith.constant 0 : i32
    return %arg2, %arg1 : i32, i32
  }
  func.func @transform_3(%arg0: i32, %arg1: i32, %arg2: i32) -> (i32, i32) {
    %c0_i32 = arith.constant 0 : i32
    return %arg0, %arg1 : i32, i32
  }
}

</mosaic_0001>

<bundles_post_ra>
// kernel: tpu_custom_call.1
= control target key start
LH: loop header
LB: loop body
LE: loop exit
PB: predicated region body
PF: predicated region fallthrough
CT: control target
= control target key end

     0   :  { %8 = vsyncpa [#allocation4], 0  ;;  %s582_s0 = inlined_call_operand.hbm [shape: f32[16,128], index: 0, kind: input, shape index: {}]   ;;  %s583_s1 = inlined_call_operand.hbm [shape: bf16[128,128], index: 1, kind: input, shape index: {}]   ;;  %s584_s2 = inlined_call_operand.hbm [shape: bf16[128,128], index: 2, kind: input, shape index: {}]   ;;  %s585_s3 = inlined_call_operand.hbm [shape: f32[16,128], index: 3, kind: output, shape index: {}]  }
   0x1   :  { %9 = vsyncpa [#allocation7], 0 }
   0x2   :  { %10 = vsyncpa [#allocation5], 0  ;;  %s534_s12 = smov [#allocation6]  }
   0x3   :  { %s28_s13 = sshll.u32 %s534_s12, 4  ;;  %s29_s13 = int_to_ptr.vmem [resolvable:$true] %s28_s13 }
   0x4   :  { %s456_s14 = scalar_lea.vmem %s29_s13, 1024  ;;  %p461_p1 = scmp.lt.s32.totalorder %s29_s13, %s29_s13 }
   0x5   :  { %p457_p0 = scmp.ne.s32.totalorder %s29_s13, %s456_s14  ;;  %p462_p2 = scmp.lt.s32.totalorder %s456_s14, %s456_s14 }
   0x7   :  { %p463_p3 = por %p462_p2, %p461_p1 }
   0x9   :  { %p464_p4 = pnand %p463_p3, %p457_p0 }
   0xb   :  { %467 = shalt.err (!%p464_p4)
}
   0xc   :  { %s535_s15 = smov 64   ;;  %s536_s16 = smov 4  }
   0xd   :  { %34 = dma.hbm_to_vmem [thread:$0]  %s583_s1, 1024, %s29_s13, [#allocation7], %s535_s15, %s535_s15, %s536_s16  }
   0xe   :  { %s537_s19 = smov [#allocation3]  }
   0xf   :  { %s16_s20 = sshll.u32 %s537_s19, 4  ;;  %s17_s20 = int_to_ptr.vmem [resolvable:$true] %s16_s20 }
  0x10   :  { %s476_s21 = scalar_lea.vmem %s17_s20, 256  ;;  %p481_p6 = scmp.lt.s32.totalorder %s17_s20, %s17_s20 }
  0x11   :  { %p477_p5 = scmp.ne.s32.totalorder %s17_s20, %s476_s21  ;;  %p482_p7 = scmp.lt.s32.totalorder %s476_s21, %s476_s21 }
  0x13   :  { %p483_p8 = por %p482_p7, %p481_p6 }
  0x15   :  { %p484_p9 = pnand %p483_p8, %p477_p5 }
  0x17   :  { %487 = shalt.err (!%p484_p9)
}
  0x18   :  { %s538_s22 = smov 128   ;;  %s539_s23 = smov 8  }
  0x19   :  { %22 = dma.hbm_to_vmem [thread:$0]  %s582_s0, 256, %s17_s20, [#allocation4], %s538_s22, %s538_s22, %s539_s23  }
  0x1a   :  { %s540_s1 = smov [#allocation8]  }
  0x1b   :  { %s40_s26 = sshll.u32 %s540_s1, 4  ;;  %s41_s26 = int_to_ptr.vmem [resolvable:$true] %s40_s26 }
  0x1c   :  { %s496_s27 = scalar_lea.vmem %s41_s26, 1024  ;;  %p501_p11 = scmp.lt.s32.totalorder %s41_s26, %s41_s26 }
  0x1d   :  { %p497_p10 = scmp.ne.s32.totalorder %s41_s26, %s496_s27  ;;  %p502_p12 = scmp.lt.s32.totalorder %s496_s27, %s496_s27 }
  0x1f   :  { %p503_p13 = por %p502_p12, %p501_p11 }
  0x21   :  { %p504_p0 = pnand %p503_p13, %p497_p10 }
  0x23   :  { %507 = shalt.err (!%p504_p0)
}
  0x24   :  { %46 = dma.hbm_to_vmem [thread:$0]  %s584_s2, 1024, %s41_s26, [#allocation7], %s535_s15, %s535_s15, %s536_s16  }
  0x25   :  { %528 = dma.done.wait [#allocation4], 256  }
  0x26   :  { %529 = vsyncadd [#allocation4], 4294967040 }
  0x27   :  { %530 = dma.done.wait [#allocation7], 2048  }
  0x28   :  { %531 = vsyncadd [#allocation7], 4294965248  ;;  %v541_v0 = vmov 0.0   ;;  %vm542_vm0 = vmmov 0   ;;  %v420_v1 = vld [vmem:[#allocation8 + $0x38] sm:$0xff]   ;;  %v422_v3 = vld [vmem:[#allocation8 + $0x30] sm:$0xff]  }
  0x29   :  { %390 = vmatprep.subr.bf16.mxu1 %v541_v0  ;;  %370 = vmatprep.subr.bf16.mxu0 %v541_v0  ;;  %v421_v2 = vld [vmem:[#allocation6 + $0x38] sm:$0xff]   ;;  %v423_v4 = vld [vmem:[#allocation6 + $0x30] sm:$0xff]   ;;  %v424_v5 = vld [vmem:[#allocation8 + $0x28] sm:$0xff]   ;;  %s543_s0 = smov [#allocation9]  }
  0x2a   :  { %406 = vmatprep.mubr.msk.bf16.mxu1 %vm542_vm0, %v541_v0  ;;  %386 = vmatprep.mubr.msk.bf16.mxu0 %vm542_vm0, %v541_v0  ;;  %v425_v6 = vld [vmem:[#allocation6 + $0x28] sm:$0xff]   ;;  %v426_v7 = vld [vmem:[#allocation8 + $0x20] sm:$0xff]   ;;  %v428_v9 = vld [vmem:[#allocation8 + $0x18] sm:$0xff]   ;;  %s321_s2 = sshll.u32 %s543_s0, 4  ;;  %s322_s2 = int_to_ptr.vmem [resolvable:$true] %s321_s2 }
  0x2b   :  { %391 = vmatpush3.bf16.msra.mxu1 %v420_v1  ;;  %371 = vmatpush3.bf16.msra.mxu0 %v421_v2  ;;  %v427_v8 = vld [vmem:[#allocation6 + $0x20] sm:$0xff]   ;;  %v429_v10 = vld [vmem:[#allocation6 + $0x18] sm:$0xff]   ;;  %v63_v11 = vld [vmem:[#allocation3] sm:$0xff]  ;;  %s508_s30 = scalar_lea.vmem %s322_s2, 256  ;;  %p513_p2 = scmp.lt.s32.totalorder %s322_s2, %s322_s2 }
  0x2c   :  { %392 = vmatprep.subr.bf16.mxu1 %v541_v0  ;;  %372 = vmatprep.subr.bf16.mxu0 %v541_v0  ;;  %v64_v12 = vld [vmem:[#allocation3 + $0x8] sm:$0xff]  ;;  %v334_v13 = vmul.f32 -1.442695, %v63_v11  ;;  %v80_v15 = vmul.f32 %v63_v11, %v63_v11  ;;  %v430_v17 = vld [vmem:[#allocation8 + $0x10] sm:$0xff]   ;;  %v432_v21 = vld [vmem:[#allocation8 + $0x8] sm:$0xff]   ;;  %p509_p1 = scmp.ne.s32.totalorder %s322_s2, %s508_s30  ;;  %p514_p3 = scmp.lt.s32.totalorder %s508_s30, %s508_s30 }
  0x2d   :  { %v335_v14 = vmul.f32 -1.442695, %v64_v12  ;;  %v81_v16 = vmul.f32 %v64_v12, %v64_v12  ;;  %v431_v18 = vld [vmem:[#allocation6 + $0x10] sm:$0xff]   ;;  %v433_v22 = vld [vmem:[#allocation6 + $0x8] sm:$0xff]   ;;  %v434_v23 = vld [vmem:[#allocation8] sm:$0xff]  }
  0x2e   :  { %v82_v19 = vadd.f32 1.0, %v80_v15  ;;  %436 = vpow2.f32 %v334_v13  ;;  %v435_v24 = vld [vmem:[#allocation6] sm:$0xff]   ;;  %p515_p4 = por %p514_p3, %p513_p2 }
  0x2f   :  { %393 = vmatpush3.bf16.msra.mxu1 %v422_v3  ;;  %373 = vmatpush3.bf16.msra.mxu0 %v423_v4  ;;  %v83_v20 = vadd.f32 1.0, %v81_v16  ;;  %438 = vpow2.f32 %v335_v14 }
  0x30   :  { %394 = vmatprep.subr.bf16.mxu1 %v541_v0  ;;  %374 = vmatprep.subr.bf16.mxu0 %v541_v0  ;;  %440 = vrcp.f32 %v82_v19  ;;  %p516_p5 = pnand %p515_p4, %p509_p1 }
  0x31   :  { %442 = vrcp.f32 %v83_v20 }
  0x33   :  { %395 = vmatpush3.bf16.msra.mxu1 %v424_v5  ;;  %375 = vmatpush3.bf16.msra.mxu0 %v425_v6 }
  0x34   :  { %396 = vmatprep.subr.bf16.mxu1 %v541_v0  ;;  %376 = vmatprep.subr.bf16.mxu0 %v541_v0 }
  0x37   :  { %397 = vmatpush3.bf16.msra.mxu1 %v426_v7  ;;  %377 = vmatpush3.bf16.msra.mxu0 %v427_v8 }
  0x38   :  { %398 = vmatprep.subr.bf16.mxu1 %v541_v0  ;;  %378 = vmatprep.subr.bf16.mxu0 %v541_v0 }
  0x3b   :  { %399 = vmatpush3.bf16.msra.mxu1 %v428_v9  ;;  %379 = vmatpush3.bf16.msra.mxu0 %v429_v10  ;;  %v437_v25 = vpop.eup %436 }
  0x3c   :  { %400 = vmatprep.subr.bf16.mxu1 %v541_v0  ;;  %380 = vmatprep.subr.bf16.mxu0 %v541_v0  ;;  %v439_v26 = vpop.eup %438  ;;  %v71_v27 = vadd.f32 1.0, %v437_v25 }
  0x3d   :  { %v441_v28 = vpop.eup %440  ;;  %v72_v29 = vadd.f32 1.0, %v439_v26 }
  0x3e   :  { %v443_v30 = vpop.eup %442  ;;  %444 = vrcp.f32 %v71_v27 }
  0x3f   :  { %401 = vmatpush3.bf16.msra.mxu1 %v430_v17  ;;  %381 = vmatpush3.bf16.msra.mxu0 %v431_v18  ;;  %v86_v31 = vpack.c.bf16 %v443_v30, %v441_v28  ;;  %446 = vrcp.f32 %v72_v29 }
  0x40   :  { %402 = vmatprep.subr.bf16.mxu1 %v541_v0  ;;  %382 = vmatprep.subr.bf16.mxu0 %v541_v0 }
  0x43   :  { %403 = vmatpush3.bf16.msra.mxu1 %v432_v21  ;;  %383 = vmatpush3.bf16.msra.mxu0 %v433_v22 }
  0x44   :  { %404 = vmatprep.subr.bf16.mxu1 %v541_v0  ;;  %384 = vmatprep.subr.bf16.mxu0 %v541_v0 }
  0x47   :  { %405 = vmatpush3.bf16.msra.mxu1 %v434_v23  ;;  %385 = vmatpush3.bf16.msra.mxu0 %v435_v24 }
  0x4a   :  { %407 = vmatmul.mubr.bf16.vlgmr.msra.gmra.mxu1 %v86_v31 }
  0x4b   :  { %v445_v32 = vpop.eup %444 }
  0x4c   :  { %v447_v33 = vpop.eup %446  ;;  %v77_v34 = vmul.f32 %v445_v32, %v63_v11 }
  0x4d   :  { %v78_v35 = vmul.f32 %v447_v33, %v64_v12 }
  0x4f   :  { %v79_v36 = vpack.c.bf16 %v78_v35, %v77_v34 }
  0x51   :  { %387 = vmatmul.mubr.bf16.vlgmr.msra.gmra.mxu0 %v79_v36 }
 0x10a   :  { %v298_v37 = vpop.f32.mrf.mxu1 }
 0x10c   :  { %v408_v38 = vpop.f32.mrf.mxu1 }
 0x10e   :  { %v301_v39 = vpop.f32.mrf.mxu1 }
 0x110   :  { %v409_v40 = vpop.f32.mrf.mxu1 }
 0x111   :  { %v187_v41 = vpop.f32.mrf.mxu0 }
 0x112   :  { %v305_v42 = vadd.f32 %v298_v37, %v187_v41 }
 0x113   :  { %v388_v43 = vpop.f32.mrf.mxu0 }
 0x114   :  { %314 = vst [vmem:[#allocation9] sm:$0xff] %v305_v42 }
 0x115   :  { %v190_v44 = vpop.f32.mrf.mxu0 }
 0x116   :  { %v306_v45 = vadd.f32 %v301_v39, %v190_v44 }
 0x117   :  { %v389_v46 = vpop.f32.mrf.mxu0 }
 0x118   :  { %315 = vst [vmem:[#allocation9 + $0x8] sm:$0xff] %v306_v45 }
 0x119   :  { %519 = shalt.err (!%p516_p5)
}
 0x11a   :  { %327 = dma.vmem_to_hbm [thread:$0]  %s322_s2, 256, %s585_s3, [#allocation5], %s538_s22, %s538_s22, %s539_s23  }
 0x11b   :  { %532 = dma.done.wait [#allocation5], 256  }
 0x11c   :  { %533 = vsyncadd [#allocation5], 4294967040 }
 0x11d   :  { %331 = vsyncpa [#allocation4], 1 }
 0x11e   :  { %332 = vsyncpa [#allocation7], 1 }
 0x11f   :  { %333 = vsyncpa [#allocation5], 1 }

</bundles_post_ra>
